<compile_context>
chip_gen: v7x
topology: tpu7x:2x2x1
jax: 0.10.0
libtpu: 0.0.40
codegen_flags: <defaults>
</compile_context>

<pallas_src>
import functools
from typing import Any, NamedTuple

import jax
import jax.numpy as jnp
from jax.experimental import pallas as pl
from jax.experimental.pallas import tpu as pltpu


# ---------------------------------------------------------------------------
# Kernel: 3-layer MLP (Linear+ReLU, Linear+ReLU, Linear) [+ residual].
# All arrays are "edge-packed": row r holds G consecutive edges, weights are
# block-diagonal kron(I_G, W), so per-edge semantics are preserved exactly.
# ---------------------------------------------------------------------------
def _edge_mlp_kernel(*refs, residual_add, residual_matmul):
    if residual_matmul:
        (src_ref, dst_ref, ea_ref,
         w1a_ref, w1b_ref, w1c_ref, b1_ref,
         w2_ref, b2_ref, w3_ref, b3_ref, p_ref, o_ref) = refs
    else:
        (src_ref, dst_ref, ea_ref,
         w1a_ref, w1b_ref, w1c_ref, b1_ref,
         w2_ref, b2_ref, w3_ref, b3_ref, o_ref) = refs
        p_ref = None

    f32 = jnp.float32
    # Layer 1, split over the three input streams (no concat anywhere).
    h = (jnp.dot(src_ref[...], w1a_ref[...], preferred_element_type=f32)
         + jnp.dot(dst_ref[...], w1b_ref[...], preferred_element_type=f32)
         + jnp.dot(ea_ref[...], w1c_ref[...], preferred_element_type=f32)
         + b1_ref[...])
    h = jnp.maximum(h, 0.0)
    h = (jnp.dot(h.astype(w2_ref.dtype), w2_ref[...], preferred_element_type=f32)
         + b2_ref[...])
    h = jnp.maximum(h, 0.0)
    out = (jnp.dot(h.astype(w3_ref.dtype), w3_ref[...], preferred_element_type=f32)
           + b3_ref[...])
    if residual_matmul:
        # edge_dim != out_dim: rectangular-identity matmul does slice/zero-pad.
        out = out + jnp.dot(ea_ref[...], p_ref[...], preferred_element_type=f32)
    elif residual_add:
        # edge_dim == out_dim: packed lanes line up exactly -> free VPU add.
        out = out + ea_ref[...].astype(f32)
    o_ref[...] = out.astype(o_ref.dtype)


def _round_up(x, m):
    return (x + m - 1) // m * m


# ---------------------------------------------------------------------------
# One-time parameter packing (hoisted out of the per-call path).
# ---------------------------------------------------------------------------
class EdgeModelConfig(NamedTuple):
    node_dim: int
    edge_dim: int
    hid: int
    out_dim: int
    group: int                 # edges packed per row
    residual_add: bool
    residual_matmul: bool
    compute_dtype: Any


def pack_edge_model_params(params, node_dim, edge_dim, *, residuals=True,
                           compute_dtype=jnp.bfloat16,
                           max_weight_vmem=4 << 20):
    """Block-diagonal kron packing + compute-dtype cast. Call ONCE and reuse."""
    w1, b1, w2, b2, w3, b3 = params
    in_dim = 2 * node_dim + edge_dim
    assert w1.shape[0] == in_dim
    hid = w1.shape[1]
    out_dim = w3.shape[1]
    residual_add = bool(residuals) and (edge_dim == out_dim)
    residual_matmul = bool(residuals) and (edge_dim != out_dim)

    # Smallest G with G*hid >= 128 lanes on the dominant (hid x hid) matmul;
    # G=1 once hid >= 128.  Also cap the resident (single-buffered) kron'd
    # weight footprint so small-VMEM parts (v5e scoped 16 MiB) stay safe.
    wbytes = jnp.dtype(compute_dtype).itemsize
    G = min(16, max(1, pl.cdiv(128, hid)))

    def _weight_bytes(g):
        return g * g * wbytes * (in_dim * hid + hid * hid + hid * out_dim
                                 + (edge_dim * out_dim if residual_matmul else 0))

    while G > 1 and _weight_bytes(G) > max_weight_vmem:
        G = max(1, G // 2)

    cd = compute_dtype
    f32 = jnp.float32
    eye = jnp.eye(G, dtype=cd)
    w1a = jnp.kron(eye, w1[:node_dim].astype(cd))               # src rows of W1
    w1b = jnp.kron(eye, w1[node_dim:2 * node_dim].astype(cd))   # dest rows of W1
    w1c = jnp.kron(eye, w1[2 * node_dim:].astype(cd))           # edge rows of W1
    w2b = jnp.kron(eye, w2.astype(cd))
    w3b = jnp.kron(eye, w3.astype(cd))
    b1t = jnp.tile(b1.astype(f32), G).reshape(1, G * hid)
    b2t = jnp.tile(b2.astype(f32), G).reshape(1, G * hid)
    b3t = jnp.tile(b3.astype(f32), G).reshape(1, G * out_dim)
    packed = [w1a, w1b, w1c, b1t, w2b, b2t, w3b, b3t]
    if residual_matmul:
        packed.append(jnp.kron(eye, jnp.eye(edge_dim, out_dim, dtype=cd)))

    cfg = EdgeModelConfig(node_dim, edge_dim, hid, out_dim, G,
                          residual_add, residual_matmul, cd)
    return cfg, tuple(packed)


def _derive_tile_rows(packed_rows, G, node_dim, edge_dim, hid, out_dim,
                      csize, obytes, weight_vmem, tile_e,
                      tile_budget=20 << 20):
    """Rows per grid step from an explicit VMEM budget; keep >= 2 grid steps."""
    per_row = (2 * (2 * G * node_dim + G * edge_dim) * csize   # 2x-buffered in streams
               + 2 * G * out_dim * obytes                      # 2x-buffered output
               + 2 * G * hid * 4)                              # f32 hidden temporaries
    rows_budget = max(8, (tile_budget - 2 * weight_vmem) // per_row // 8 * 8)
    tile_e_rows = max(8, (max(tile_e, G) // G) // 8 * 8)
    tile_rows = min(rows_budget, tile_e_rows)
    if tile_rows >= packed_rows:
        if packed_rows >= 16:
            # Split into (at least) 2 steps so both v7x TensorCores get work.
            tile_rows = _round_up(pl.cdiv(packed_rows, 2), 8)
        else:
            tile_rows = packed_rows            # full extent, single step
    return tile_rows


# ---------------------------------------------------------------------------
# Forward pass.
# ---------------------------------------------------------------------------
def edge_model_forward(src, dest, edge_attr, packed_weights, *, cfg,
                       tile_e=32768, vmem_limit_bytes=40 << 20):
    """JAX wrapper reproducing EdgeModel.forward semantics (bf16 MXU compute)."""
    node_dim, edge_dim = cfg.node_dim, cfg.edge_dim
    G, hid, out_dim = cfg.group, cfg.hid, cfg.out_dim
    E = src.shape[0]
    assert src.shape == (E, node_dim) and dest.shape == (E, node_dim)
    assert edge_attr.shape == (E, edge_dim)

    out_dtype = jnp.result_type(src.dtype, dest.dtype, edge_attr.dtype)
    csize = jnp.dtype(cfg.compute_dtype).itemsize
    obytes = jnp.dtype(out_dtype).itemsize

    E_pad = _round_up(E, G)
    packed_rows = E_pad // G

    def prep(x, width):
        # pad (< G rows) + compute-dtype cast + pack reshape fuse into one XLA
        # pass under jit (and with whatever produced x), so the G-padding does
        # not add an extra HBM sweep.
        if E_pad != E:
            x = jnp.pad(x, ((0, E_pad - E), (0, 0)))
        return x.astype(cfg.compute_dtype).reshape(packed_rows, G * width)

    src_p = prep(src, node_dim)
    dst_p = prep(dest, node_dim)
    ea_p = prep(edge_attr, edge_dim)

    weight_vmem = sum(int(w.size) * jnp.dtype(w.dtype).itemsize
                      for w in packed_weights)
    tile_rows = _derive_tile_rows(packed_rows, G, node_dim, edge_dim, hid,
                                  out_dim, csize, obytes, weight_vmem, tile_e)
    grid = (pl.cdiv(packed_rows, tile_rows),)

    row = lambda i: (i, 0)
    const = lambda i: (0, 0)
    in_specs = [
        pl.BlockSpec((tile_rows, G * node_dim), row),     # src (packed)
        pl.BlockSpec((tile_rows, G * node_dim), row),     # dest (packed)
        pl.BlockSpec((tile_rows, G * edge_dim), row),     # edge_attr (packed)
    ]
    # Grid-invariant weights/biases: block index never changes, so single-buffer
    # them (double-buffering would only double their VMEM footprint).
    in_specs += [pl.BlockSpec(tuple(w.shape), const, pipeline_mode=pl.Buffered(1))
                 for w in packed_weights]

    in_dim = 2 * node_dim + edge_dim
    # Logical FLOPs (scheduler hint only; not the G-inflated block-diag MACs).
    flops = 2 * E_pad * (in_dim * hid + hid * hid + hid * out_dim)
    bytes_accessed = (E_pad * (2 * node_dim + edge_dim) * csize
                      + E_pad * out_dim * obytes + weight_vmem)
    cost = pl.CostEstimate(flops=flops, transcendentals=0,
                           bytes_accessed=bytes_accessed)

    out_p = pl.pallas_call(
        functools.partial(_edge_mlp_kernel,
                          residual_add=cfg.residual_add,
                          residual_matmul=cfg.residual_matmul),
        out_shape=jax.ShapeDtypeStruct((packed_rows, G * out_dim), out_dtype),
        grid_spec=pltpu.PrefetchScalarGridSpec(
            num_scalar_prefetch=0,
            grid=grid,
            in_specs=in_specs,
            out_specs=pl.BlockSpec((tile_rows, G * out_dim), row),
        ),
        compiler_params=pltpu.CompilerParams(
            dimension_semantics=("parallel",),
            vmem_limit_bytes=vmem_limit_bytes),
        cost_estimate=cost,
    )(src_p, dst_p, ea_p, *packed_weights)

    out = out_p.reshape(E_pad, out_dim)   # free un-packing reshape
    return out[:E] if E_pad != E else out


# ---------------------------------------------------------------------------
# Deterministic parameter init (shapes per EdgeModel.__init__ with n_layers=3)
# ---------------------------------------------------------------------------
def init_params(key, node_dim, edge_dim, n_hiddens, edge_out_dim):
    in_dim = 2 * node_dim + edge_dim
    ks = jax.random.split(key, 6)
    scale = 0.1
    w1 = scale * jax.random.normal(ks[0], (in_dim, n_hiddens), jnp.float32)
    b1 = scale * jax.random.normal(ks[1], (n_hiddens,), jnp.float32)
    w2 = scale * jax.random.normal(ks[2], (n_hiddens, n_hiddens), jnp.float32)
    b2 = scale * jax.random.normal(ks[3], (n_hiddens,), jnp.float32)
    w3 = scale * jax.random.normal(ks[4], (n_hiddens, edge_out_dim), jnp.float32)
    b3 = scale * jax.random.normal(ks[5], (edge_out_dim,), jnp.float32)
    return (w1, b1, w2, b2, w3, b3)


def reference_forward(src, dest, edge_attr, params, residuals=True,
                      compute_dtype=None):
    """Pure-JAX reference mirroring the PyTorch forward.

    With compute_dtype=jnp.bfloat16 it emulates the kernel's numerics (bf16
    matmul operands, f32 accumulation/bias); with None it is the exact f32
    reference of the original module."""
    w1, b1, w2, b2, w3, b3 = params
    f32 = jnp.float32
    cast = (lambda x: x) if compute_dtype is None else (lambda x: x.astype(compute_dtype))
    x = jnp.concatenate([src, dest, edge_attr], axis=1)
    h = jnp.dot(cast(x), cast(w1), preferred_element_type=f32) + b1.astype(f32)
    h = jnp.maximum(h, 0.0)
    h = jnp.dot(cast(h), cast(w2), preferred_element_type=f32) + b2.astype(f32)
    h = jnp.maximum(h, 0.0)
    out = jnp.dot(cast(h), cast(w3), preferred_element_type=f32) + b3.astype(f32)
    if residuals:
        ea = edge_attr if compute_dtype is None else cast(edge_attr).astype(f32)
        e_dim, o_dim = edge_attr.shape[1], out.shape[1]
        if o_dim < e_dim:
            ea = ea[:, :o_dim]
        elif o_dim > e_dim:
            ea = jnp.zeros_like(out).at[:, :e_dim].set(ea)
        out = out + ea
    return out


if __name__ == "__main__":
    # Small, module-consistent shapes: 250 edges (exercises the E%G tail),
    # node channels=8, edge channels=8, hidden=32, n_layers=3, residuals=True.
    # tile_e=128 keeps the test grid multi-step (2 steps).
    E, NODE, EDGE, HID, EOUT = 250, 8, 8, 32, 8
    key = jax.random.PRNGKey(0)
    k_src, k_dst, k_edge, k_p1, k_p2 = jax.random.split(key, 5)

    src = jax.random.normal(k_src, (E, NODE), jnp.float32)
    dest = jax.random.normal(k_dst, (E, NODE), jnp.float32)
    edge_attr = jax.random.normal(k_edge, (E, EDGE), jnp.float32)

    def check(params, residuals, eout):
        cfg, packed = pack_edge_model_params(params, NODE, EDGE,
                                             residuals=residuals)
        fwd = jax.jit(functools.partial(edge_model_forward, cfg=cfg, tile_e=128))
        out = jax.block_until_ready(fwd(src, dest, edge_attr, packed))
        assert out.shape == (E, eout)
        # Tight check vs a reference with matching (bf16-operand) numerics.
        ref_bf = reference_forward(src, dest, edge_attr, params,
                                   residuals=residuals,
                                   compute_dtype=jnp.bfloat16)
        assert jnp.allclose(out, ref_bf, atol=1e-2, rtol=1e-2), \
            float(jnp.max(jnp.abs(out - ref_bf)))
        # Loose semantic check vs the exact f32 module forward.
        ref_f32 = reference_forward(src, dest, edge_attr, params,
                                    residuals=residuals)
        assert jnp.allclose(out, ref_f32, atol=5e-2, rtol=5e-2), \
            float(jnp.max(jnp.abs(out - ref_f32)))

    # residuals=True, edge_dim == out_dim  -> in-kernel VPU residual add.
    params_a = init_params(k_p1, NODE, EDGE, HID, EOUT)
    check(params_a, residuals=True, eout=EOUT)
    # residuals=False -> no residual stream at all.
    check(params_a, residuals=False, eout=EOUT)
    # residuals=True, out_dim > edge_dim -> zero-pad residual (identity matmul).
    params_b = init_params(k_p2, NODE, EDGE, HID, 16)
    check(params_b, residuals=True, eout=16)

    print("KERNEL_OK")
</pallas_src>

<mosaic_0001>
module attributes {stable_mosaic.version = 11 : i64} {
  func.func @_edge_mlp_kernel(%arg0: i32, %arg1: memref<32x32xbf16, #tpu.memory_space<vmem>>, %arg2: memref<32x32xbf16, #tpu.memory_space<vmem>>, %arg3: memref<32x32xbf16, #tpu.memory_space<vmem>>, %arg4: memref<32x128xbf16, #tpu.memory_space<vmem>>, %arg5: memref<32x128xbf16, #tpu.memory_space<vmem>>, %arg6: memref<32x128xbf16, #tpu.memory_space<vmem>>, %arg7: memref<1x128xf32, #tpu.memory_space<vmem>>, %arg8: memref<128x128xbf16, #tpu.memory_space<vmem>>, %arg9: memref<1x128xf32, #tpu.memory_space<vmem>>, %arg10: memref<128x32xbf16, #tpu.memory_space<vmem>>, %arg11: memref<1x32xf32, #tpu.memory_space<vmem>>, %arg12: memref<32x32xf32, #tpu.memory_space<vmem>>) attributes {dimension_semantics = [#tpu.dimension_semantics<parallel>], iteration_bounds = array<i64: 2>, scalar_prefetch = 0 : i64, scratch_operands = 0 : i64, tpu.core_type = #tpu.core_type<tc>, window_params = [{transform_indices = @transform_0, window_bounds = array<i64: 32, 32>}, {transform_indices = @transform_1, window_bounds = array<i64: 32, 32>}, {transform_indices = @transform_2, window_bounds = array<i64: 32, 32>}, {pipeline_mode = #tpu.pipeline_mode<synchronous>, transform_indices = @transform_3, window_bounds = array<i64: 32, 128>}, {pipeline_mode = #tpu.pipeline_mode<synchronous>, transform_indices = @transform_4, window_bounds = array<i64: 32, 128>}, {pipeline_mode = #tpu.pipeline_mode<synchronous>, transform_indices = @transform_5, window_bounds = array<i64: 32, 128>}, {pipeline_mode = #tpu.pipeline_mode<synchronous>, transform_indices = @transform_6, window_bounds = array<i64: 1, 128>}, {pipeline_mode = #tpu.pipeline_mode<synchronous>, transform_indices = @transform_7, window_bounds = array<i64: 128, 128>}, {pipeline_mode = #tpu.pipeline_mode<synchronous>, transform_indices = @transform_8, window_bounds = array<i64: 1, 128>}, {pipeline_mode = #tpu.pipeline_mode<synchronous>, transform_indices = @transform_9, window_bounds = array<i64: 128, 32>}, {pipeline_mode = #tpu.pipeline_mode<synchronous>, transform_indices = @transform_10, window_bounds = array<i64: 1, 32>}, {transform_indices = @transform_11, window_bounds = array<i64: 32, 32>}]} {
    %c0 = arith.constant 0 : index
    %c0_0 = arith.constant 0 : index
    %0 = vector.load %arg1[%c0, %c0_0] : memref<32x32xbf16, #tpu.memory_space<vmem>>, vector<32x32xbf16>
    %c0_1 = arith.constant 0 : index
    %c0_2 = arith.constant 0 : index
    %1 = vector.load %arg4[%c0_1, %c0_2] : memref<32x128xbf16, #tpu.memory_space<vmem>>, vector<32x128xbf16>
    %cst = arith.constant dense<0.000000e+00> : vector<32x128xf32>
    %2 = tpu.matmul %0, %1, %cst {dimension_numbers = #tpu.dot_dimension_numbers<[1], [0], [0], [1], [0, 0, 1, 1], [], []>} : vector<32x32xbf16>, vector<32x128xbf16>, vector<32x128xf32> -> vector<32x128xf32>
    %c0_3 = arith.constant 0 : index
    %c0_4 = arith.constant 0 : index
    %3 = vector.load %arg2[%c0_3, %c0_4] : memref<32x32xbf16, #tpu.memory_space<vmem>>, vector<32x32xbf16>
    %c0_5 = arith.constant 0 : index
    %c0_6 = arith.constant 0 : index
    %4 = vector.load %arg5[%c0_5, %c0_6] : memref<32x128xbf16, #tpu.memory_space<vmem>>, vector<32x128xbf16>
    %cst_7 = arith.constant dense<0.000000e+00> : vector<32x128xf32>
    %5 = tpu.matmul %3, %4, %cst_7 {dimension_numbers = #tpu.dot_dimension_numbers<[1], [0], [0], [1], [0, 0, 1, 1], [], []>} : vector<32x32xbf16>, vector<32x128xbf16>, vector<32x128xf32> -> vector<32x128xf32>
    %6 = arith.addf %2, %5 : vector<32x128xf32>
    %c0_8 = arith.constant 0 : index
    %c0_9 = arith.constant 0 : index
    %7 = vector.load %arg3[%c0_8, %c0_9] : memref<32x32xbf16, #tpu.memory_space<vmem>>, vector<32x32xbf16>
    %c0_10 = arith.constant 0 : index
    %c0_11 = arith.constant 0 : index
    %8 = vector.load %arg6[%c0_10, %c0_11] : memref<32x128xbf16, #tpu.memory_space<vmem>>, vector<32x128xbf16>
    %cst_12 = arith.constant dense<0.000000e+00> : vector<32x128xf32>
    %9 = tpu.matmul %7, %8, %cst_12 {dimension_numbers = #tpu.dot_dimension_numbers<[1], [0], [0], [1], [0, 0, 1, 1], [], []>} : vector<32x32xbf16>, vector<32x128xbf16>, vector<32x128xf32> -> vector<32x128xf32>
    %10 = arith.addf %6, %9 : vector<32x128xf32>
    %c0_13 = arith.constant 0 : index
    %c0_14 = arith.constant 0 : index
    %11 = vector.load %arg7[%c0_13, %c0_14] : memref<1x128xf32, #tpu.memory_space<vmem>>, vector<1x128xf32>
    %12 = vector.broadcast %11 : vector<1x128xf32> to vector<32x128xf32>
    %13 = arith.addf %10, %12 : vector<32x128xf32>
    %cst_15 = arith.constant 0.000000e+00 : f32
    %14 = vector.broadcast %cst_15 : f32 to vector<32x128xf32>
    %15 = arith.maximumf %13, %14 : vector<32x128xf32>
    %16 = arith.truncf %15 : vector<32x128xf32> to vector<32x128xbf16>
    %c0_16 = arith.constant 0 : index
    %c0_17 = arith.constant 0 : index
    %17 = vector.load %arg8[%c0_16, %c0_17] : memref<128x128xbf16, #tpu.memory_space<vmem>>, vector<128x128xbf16>
    %cst_18 = arith.constant dense<0.000000e+00> : vector<32x128xf32>
    %18 = tpu.matmul %16, %17, %cst_18 {dimension_numbers = #tpu.dot_dimension_numbers<[1], [0], [0], [1], [0, 0, 1, 1], [], []>} : vector<32x128xbf16>, vector<128x128xbf16>, vector<32x128xf32> -> vector<32x128xf32>
    %c0_19 = arith.constant 0 : index
    %c0_20 = arith.constant 0 : index
    %19 = vector.load %arg9[%c0_19, %c0_20] : memref<1x128xf32, #tpu.memory_space<vmem>>, vector<1x128xf32>
    %20 = vector.broadcast %19 : vector<1x128xf32> to vector<32x128xf32>
    %21 = arith.addf %18, %20 : vector<32x128xf32>
    %cst_21 = arith.constant 0.000000e+00 : f32
    %22 = vector.broadcast %cst_21 : f32 to vector<32x128xf32>
    %23 = arith.maximumf %21, %22 : vector<32x128xf32>
    %24 = arith.truncf %23 : vector<32x128xf32> to vector<32x128xbf16>
    %c0_22 = arith.constant 0 : index
    %c0_23 = arith.constant 0 : index
    %25 = vector.load %arg10[%c0_22, %c0_23] : memref<128x32xbf16, #tpu.memory_space<vmem>>, vector<128x32xbf16>
    %cst_24 = arith.constant dense<0.000000e+00> : vector<32x32xf32>
    %26 = tpu.matmul %24, %25, %cst_24 {dimension_numbers = #tpu.dot_dimension_numbers<[1], [0], [0], [1], [0, 0, 1, 1], [], []>} : vector<32x128xbf16>, vector<128x32xbf16>, vector<32x32xf32> -> vector<32x32xf32>
    %c0_25 = arith.constant 0 : index
    %c0_26 = arith.constant 0 : index
    %27 = vector.load %arg11[%c0_25, %c0_26] : memref<1x32xf32, #tpu.memory_space<vmem>>, vector<1x32xf32>
    %28 = vector.broadcast %27 : vector<1x32xf32> to vector<32x32xf32>
    %29 = arith.addf %26, %28 : vector<32x32xf32>
    %c0_27 = arith.constant 0 : index
    %c0_28 = arith.constant 0 : index
    %30 = vector.load %arg3[%c0_27, %c0_28] : memref<32x32xbf16, #tpu.memory_space<vmem>>, vector<32x32xbf16>
    %31 = arith.extf %30 : vector<32x32xbf16> to vector<32x32xf32>
    %32 = arith.addf %29, %31 : vector<32x32xf32>
    %c0_29 = arith.constant 0 : index
    %c0_30 = arith.constant 0 : index
    %33 = vector.load %arg12[%c0_29, %c0_30] : memref<32x32xf32, #tpu.memory_space<vmem>>, vector<32x32xf32>
    tpu.vector_store %arg12[%c0_29, %c0_30], %32 {strides = array<i32>} : memref<32x32xf32, #tpu.memory_space<vmem>>, vector<32x32xf32>,
    return
  }
  func.func @transform_0(%arg0: i32) -> (i32, i32) {
    %c0_i32 = arith.constant 0 : i32
    %c0_i32_0 = arith.constant 0 : i32
    return %arg0, %c0_i32 : i32, i32
  }
  func.func @transform_1(%arg0: i32) -> (i32, i32) {
    %c0_i32 = arith.constant 0 : i32
    %c0_i32_0 = arith.constant 0 : i32
    return %arg0, %c0_i32 : i32, i32
  }
  func.func @transform_2(%arg0: i32) -> (i32, i32) {
    %c0_i32 = arith.constant 0 : i32
    %c0_i32_0 = arith.constant 0 : i32
    return %arg0, %c0_i32 : i32, i32
  }
  func.func @transform_3(%arg0: i32) -> (i32, i32) {
    %c0_i32 = arith.constant 0 : i32
    %c0_i32_0 = arith.constant 0 : i32
    %c0_i32_1 = arith.constant 0 : i32
    return %c0_i32, %c0_i32_0 : i32, i32
  }
  func.func @transform_4(%arg0: i32) -> (i32, i32) {
    %c0_i32 = arith.constant 0 : i32
    %c0_i32_0 = arith.constant 0 : i32
    %c0_i32_1 = arith.constant 0 : i32
    return %c0_i32, %c0_i32_0 : i32, i32
  }
  func.func @transform_5(%arg0: i32) -> (i32, i32) {
    %c0_i32 = arith.constant 0 : i32
    %c0_i32_0 = arith.constant 0 : i32
    %c0_i32_1 = arith.constant 0 : i32
    return %c0_i32, %c0_i32_0 : i32, i32
  }
  func.func @transform_6(%arg0: i32) -> (i32, i32) {
    %c0_i32 = arith.constant 0 : i32
    %c0_i32_0 = arith.constant 0 : i32
    %c0_i32_1 = arith.constant 0 : i32
    return %c0_i32, %c0_i32_0 : i32, i32
  }
  func.func @transform_7(%arg0: i32) -> (i32, i32) {
    %c0_i32 = arith.constant 0 : i32
    %c0_i32_0 = arith.constant 0 : i32
    %c0_i32_1 = arith.constant 0 : i32
    return %c0_i32, %c0_i32_0 : i32, i32
  }
  func.func @transform_8(%arg0: i32) -> (i32, i32) {
    %c0_i32 = arith.constant 0 : i32
    %c0_i32_0 = arith.constant 0 : i32
    %c0_i32_1 = arith.constant 0 : i32
    return %c0_i32, %c0_i32_0 : i32, i32
  }
  func.func @transform_9(%arg0: i32) -> (i32, i32) {
    %c0_i32 = arith.constant 0 : i32
    %c0_i32_0 = arith.constant 0 : i32
    %c0_i32_1 = arith.constant 0 : i32
    return %c0_i32, %c0_i32_0 : i32, i32
  }
  func.func @transform_10(%arg0: i32) -> (i32, i32) {
    %c0_i32 = arith.constant 0 : i32
    %c0_i32_0 = arith.constant 0 : i32
    %c0_i32_1 = arith.constant 0 : i32
    return %c0_i32, %c0_i32_0 : i32, i32
  }
  func.func @transform_11(%arg0: i32) -> (i32, i32) {
    %c0_i32 = arith.constant 0 : i32
    %c0_i32_0 = arith.constant 0 : i32
    return %arg0, %c0_i32 : i32, i32
  }
}

</mosaic_0001>

<bundles_post_ra>
// kernel: edge_model_forward.1
= control target key start
LH: loop header
LB: loop body
LE: loop exit
PB: predicated region body
PF: predicated region fallthrough
CT: control target
= control target key end

     0   :  { %s1312_s17 = smov 0   ;;  %s1434_s0 = inlined_call_operand.vmem [shape: bf16[63,32], index: 0, kind: input, shape index: {}]   ;;  %s1435_s1 = inlined_call_operand.vmem [shape: bf16[63,32], index: 1, kind: input, shape index: {}]   ;;  %s1436_s2 = inlined_call_operand.vmem [shape: bf16[63,32], index: 2, kind: input, shape index: {}]   ;;  %s1437_s3 = inlined_call_operand.vmem [shape: bf16[32,128], index: 3, kind: input, shape index: {}]   ;;  %s1438_s4 = inlined_call_operand.vmem [shape: bf16[32,128], index: 4, kind: input, shape index: {}]   ;;  %s1439_s5 = inlined_call_operand.vmem [shape: bf16[32,128], index: 5, kind: input, shape index: {}]   ;;  %s1440_s6 = inlined_call_operand.vmem [shape: f32[1,128], index: 6, kind: input, shape index: {}]   ;;  %s1441_s7 = inlined_call_operand.vmem [shape: bf16[128,128], index: 7, kind: input, shape index: {}]   ;;  %s1442_s8 = inlined_call_operand.vmem [shape: f32[1,128], index: 8, kind: input, shape index: {}]   ;;  %s1443_s9 = inlined_call_operand.vmem [shape: bf16[128,32], index: 9, kind: input, shape index: {}]   ;;  %s1444_s10 = inlined_call_operand.vmem [shape: f32[1,32], index: 10, kind: input, shape index: {}]   ;;  %s1445_s11 = inlined_call_operand.vmem [shape: f32[63,32], index: 11, kind: output, shape index: {}]  }
   0x1 LB: > { %s1050_s18 = sadd.s32 4294967295, %s1250_s17   ;;  %p1054_p0 = scmp.ge.s32.totalorder %s1250_s17, 1  ;;  %s1250_s17 = sphi %s1312_s17, %s21_s17  }
   0x2   : > { %p360_p1 = scmp.lt.s32.totalorder %s1250_s17, 3 }
   0x4   : > { %p361_p2 = pnand %p1054_p0, %p360_p1 }
   0x5   : > { %v1214_v0 = vld [vmem:[%s1437_s3] sm:$0xff] (!%p361_p2)   ;;  %s1055_s21 = sshll.u32 (!%p361_p2), %s1050_s18, 2  ;;  %v1215_v1 = vld [vmem:[%s1437_s3 + $0x8] sm:$0xff] (!%p361_p2)   ;;  %vm473_vm0 = vcmask (!%p361_p2), 261120   ;;  %v1228_v14 = vld [vmem:[%s1441_s7 + $0x10] sm:$0xff] (!%p361_p2)  }
   0x6   : > { %364 = sbr.rel (%p361_p2) target bundleno = 696 (0x2b8), region = 64  ;;  %p411_p3 = scmp.lt.s32.totalorder (!%p361_p2), %s1055_s21, 7  ;;  %1142 = vmatprep.subr.bf16.mxu0 (!%p361_p2), %v1214_v0  ;;  %v1218_v2 = vld [vmem:[%s1439_s5] sm:$0xff] (!%p361_p2)   ;;  %v1220_v4 = vld [vmem:[%s1438_s4 + $0x8] sm:$0xff] (!%p361_p2)   ;;  %v1229_v15 = vld [vmem:[%s1441_s7 + $0x18] sm:$0xff] (!%p361_p2)  }
   0x7   : > { %1143 = vmatpush3.bf16.msra.mxu0 (!%p361_p2), %v1214_v0  ;;  %v1219_v3 = vld [vmem:[%s1438_s4] sm:$0xff] (!%p361_p2)   ;;  %v1221_v5 = vld [vmem:[%s1439_s5 + $0x8] sm:$0xff] (!%p361_p2)   ;;  %v1232_v18 = vld [vmem:[%s1441_s7 + $0x30] sm:$0xff] (!%p361_p2)  }
   0x8   : > { %1144 = vmatprep.subr.bf16.mxu0 (!%p361_p2), %v1215_v1  ;;  %1134 = vmatprep.subr.bf16.mxu1 (!%p361_p2), %v1219_v3  ;;  %v1226_v6 = vld [vmem:[%s1441_s7] sm:$0xff] (!%p361_p2)   ;;  %v1227_v12 = vld [vmem:[%s1441_s7 + $0x8] sm:$0xff] (!%p361_p2)   ;;  %v1233_v19 = vld [vmem:[%s1441_s7 + $0x38] sm:$0xff] (!%p361_p2)  }
   0x9   : > { %1135 = vmatpush3.bf16.msra.mxu1 (!%p361_p2), %v1219_v3  ;;  %v1230_v16 = vld [vmem:[%s1441_s7 + $0x20] sm:$0xff] (!%p361_p2)   ;;  %v1231_v17 = vld [vmem:[%s1441_s7 + $0x28] sm:$0xff] (!%p361_p2)   ;;  %v1236_v22 = vld [vmem:[%s1443_s9 + $0x10] sm:$0xff] (!%p361_p2)  }
   0xa   : > { %1136 = vmatprep.subr.bf16.mxu1 (!%p361_p2), %v1220_v4  ;;  %v1234_v20 = vld [vmem:[%s1443_s9] sm:$0xff] (!%p361_p2)   ;;  %v1235_v21 = vld [vmem:[%s1443_s9 + $0x8] sm:$0xff] (!%p361_p2)   ;;  %v1237_v23 = vld [vmem:[%s1443_s9 + $0x18] sm:$0xff] (!%p361_p2)  }
   0xb   : > { %1145 = vmatpush3.bf16.msra.mxu0 (!%p361_p2), %v1215_v1  ;;  %v1238_v24 = vld [vmem:[%s1443_s9 + $0x20] sm:$0xff] (!%p361_p2)   ;;  %v1239_v25 = vld [vmem:[%s1443_s9 + $0x28] sm:$0xff] (!%p361_p2)   ;;  %v1240_v49 = vld [vmem:[%s1443_s9 + $0x30] sm:$0xff] (!%p361_p2)  }
   0xc   : > { %1150 = vmatprep.subr.bf16.mxu0 (!%p361_p2), %v1218_v2  ;;  %v1081_v31 = vld [vmem:[%s1440_s6] ss:$0 sm:$0xff] (!%p361_p2)  ;;  %v1241_v50 = vld [vmem:[%s1443_s9 + $0x38] sm:$0xff] (!%p361_p2)  }
   0xd   : > { %s1447_s21 = smov (!%p411_p3, %s1055_s21), 7  ;;  %1137 = vmatpush3.bf16.msra.mxu1 %v1220_v4  ;;  %v1082_v51 = vld [vmem:[%s1442_s8] ss:$0 sm:$0xff] }
   0xe   : > { %s1056_s30 = sshll.u32 %s1447_s21, 2  ;;  %1158 = vmatprep.subr.bf16.mxu1 %v1226_v6  ;;  %s1062_s29 = sshll.u32 %s1447_s21, 3 }
   0xf   : > { %s414_s14 = scalar_lea.vmem %s1434_s0, %s1056_s30  ;;  %s420_s23 = scalar_lea.vmem %s1435_s1, %s1056_s30 }
  0x10   : > { %v1216_v7 = vld [vmem:[%s414_s14] sm:$0xff]   ;;  %s426_s26 = scalar_lea.vmem %s1436_s2, %s1056_s30  ;;  %v1217_v8 = vld [vmem:[%s414_s14 + $0x8] sm:$0xff]   ;;  %s432_s13 = scalar_lea.vmem %s1445_s11, %s1062_s29 }
  0x11   : > { %1146 = vmatprep.mubr.msk.bf16.mxu0 %vm473_vm0, %v1216_v7  ;;  %v1222_v9 = vld [vmem:[%s420_s23] sm:$0xff]   ;;  %v1223_v10 = vld [vmem:[%s420_s23 + $0x8] sm:$0xff]  }
  0x12   : > { %1147 = vmatmul.mubr.msk.bf16.vlgmr.msra.gmra.mrb[0].mxu0 %vm473_vm0, %v1217_v8  ;;  %1138 = vmatprep.mubr.msk.bf16.mxu1 %vm473_vm0, %v1222_v9  ;;  %v1356_v11 = vld [vmem:[%s426_s26] sm:$0xff]   ;;  %v1364_v13 = vld [vmem:[%s426_s26 + $0x8] sm:$0xff]  }
  0x13   : > { %1151 = vmatpush3.bf16.msra.mxu0 %v1218_v2  ;;  %1139 = vmatmul.mubr.msk.bf16.vlgmr.msra.gmra.mrb[0].mxu1 %vm473_vm0, %v1223_v10  ;;  %v1091_v2 = vld [vmem:[%s1444_s10] ss:$0 sm:$0xff]  ;;  %v958_v4 = vunpack.c.l.bf16 %v1356_v11  ;;  %v959_v8 = vunpack.c.h.bf16 %v1356_v11  ;;  %v960_v10 = vunpack.c.l.bf16 %v1364_v13 }
  0x14   : > { %1152 = vmatprep.subr.bf16.mxu0 %v1221_v5  ;;  %1154 = vmatprep.mubr.msk.bf16.mxu0 %vm473_vm0, %v1356_v11 }
  0x15   : > { %1159 = vmatpush3.bf16.msra.mxu1 %v1226_v6 }
  0x16   : > { %1160 = vmatprep.subr.bf16.mxu1 %v1227_v12 }
  0x17   : > { %1153 = vmatpush3.bf16.msra.mxu0 %v1221_v5 }
  0x18   : > { %1178 = vmatprep.subr.bf16.mxu0 %v1234_v20 }
  0x19   : > { %1161 = vmatpush3.bf16.msra.mxu1 %v1227_v12 }
  0x1a   : > { %1162 = vmatprep.subr.bf16.mxu1 %v1228_v14 }
  0x1d   : > { %1163 = vmatpush3.bf16.msra.mxu1 %v1228_v14 }
  0x1e   : > { %1155 = vmatmul.mubr.msk.bf16.vlgmr.msra.gmra.mrb[0].mxu0 %vm473_vm0, %v1364_v13  ;;  %1164 = vmatprep.subr.bf16.mxu1 %v1229_v15 }
  0x1f   : > { %1179 = vmatpush3.bf16.msra.mxu0 %v1234_v20 }
  0x20   : > { %1180 = vmatprep.subr.bf16.mxu0 %v1235_v21 }
  0x21   : > { %1165 = vmatpush3.bf16.msra.mxu1 %v1229_v15 }
  0x22   : > { %1166 = vmatprep.subr.bf16.mxu1 %v1230_v16 }
  0x23   : > { %1181 = vmatpush3.bf16.msra.mxu0 %v1235_v21 }
  0x24   : > { %1182 = vmatprep.subr.bf16.mxu0 %v1236_v22 }
  0x25   : > { %1167 = vmatpush3.bf16.msra.mxu1 %v1230_v16  ;;  %v961_v16 = vunpack.c.h.bf16 %v1364_v13 }
  0x26   : > { %1168 = vmatprep.subr.bf16.mxu1 %v1231_v17 }
  0x27   : > { %1183 = vmatpush3.bf16.msra.mxu0 %v1236_v22 }
  0x28   : > { %1184 = vmatprep.subr.bf16.mxu0 %v1237_v23 }
  0x29   : > { %1169 = vmatpush3.bf16.msra.mxu1 %v1231_v17 }
  0x2a   : > { %1170 = vmatprep.subr.bf16.mxu1 %v1232_v18 }
  0x2b   : > { %1185 = vmatpush3.bf16.msra.mxu0 %v1237_v23 }
  0x2c   : > { %1186 = vmatprep.subr.bf16.mxu0 %v1238_v24 }
  0x2d   : > { %1171 = vmatpush3.bf16.msra.mxu1 %v1232_v18 }
  0x2e   : > { %1172 = vmatprep.subr.bf16.mxu1 %v1233_v19 }
  0x2f   : > { %1187 = vmatpush3.bf16.msra.mxu0 %v1238_v24 }
  0x30   : > { %1188 = vmatprep.subr.bf16.mxu0 %v1239_v25 }
  0x31   : > { %1173 = vmatpush3.bf16.msra.mxu1 %v1233_v19 }
  0x33   : > { %1189 = vmatpush3.bf16.msra.mxu0 %v1239_v25 }
  0x34   : > { %1190 = vmatprep.subr.bf16.mxu0 %v1240_v49 }
  0x37   : > { %1191 = vmatpush3.bf16.msra.mxu0 %v1240_v49 }
  0x38   : > { %1192 = vmatprep.subr.bf16.mxu0 %v1241_v50 }
  0x3b   : > { %1193 = vmatpush3.bf16.msra.mxu0 %v1241_v50 }
  0xe6   : > { %v1140_v26 = vpop.f32.mrb[0].mxu1 }
  0xe7   : > { %v514_v27 = vpop.f32.mrb[1].mxu1 }
  0xe8   : > { %v1141_v28 = vpop.f32.mrb[2].mxu1 }
  0xe9   : > { %v517_v29 = vpop.f32.mrb[3].mxu1 }
  0xf1   : > { %v1156_v30 = vpop.f32.mrb[0].mxu0 }
  0xf2   : > { %v1198_v32 = vadd.f32 %v1156_v30, %v1140_v26  ;;  %v676_v33 = vpop.f32.mrb[1].mxu0 }
  0xf3   : > { %v1199_v34 = vadd.f32 %v676_v33, %v514_v27  ;;  %v1157_v35 = vpop.f32.mrb[2].mxu0 }
  0xf4   : > { %v704_v36 = vadd.f32 %v1198_v32, %v1081_v31  ;;  %v1200_v37 = vadd.f32 %v1157_v35, %v1141_v28  ;;  %v679_v38 = vpop.f32.mrb[3].mxu0 }
  0xf5   : > { %v702_v39 = vadd.f32 %v1199_v34, %v1081_v31  ;;  %v1201_v40 = vadd.f32 %v679_v38, %v517_v29 }
  0xf6   : > { %v705_v41 = vadd.f32 %v1200_v37, %v1081_v31  ;;  %v708_v43 = vmax.f32 %v704_v36, 0.0 }
  0xf7   : > { %v703_v42 = vadd.f32 %v1201_v40, %v1081_v31  ;;  %v706_v45 = vmax.f32 %v702_v39, 0.0 }
  0xf8   : > { %v709_v44 = vmax.f32 %v705_v41, 0.0 }
  0xf9   : > { %v707_v46 = vmax.f32 %v703_v42, 0.0 }
  0xfa   : > { %v711_v47 = vpack.c.bf16 %v709_v44, %v708_v43 }
  0xfb   : > { %v710_v48 = vpack.c.bf16 %v707_v46, %v706_v45 }
  0xfd   : > { %1174 = vmatprep.mubr.bf16.mxu1 %v710_v48 }
  0xfe   : > { %1175 = vmatmul.mubr.bf16.vlgmr.msra.gmra.mrb[4].mxu1 %v711_v47 }
 0x1d1   : > { %v1176_v52 = vpop.f32.mrb[4].mxu1 }
 0x1d2   : > { %v826_v53 = vadd.f32 %v1176_v52, %v1082_v51  ;;  %v817_v54 = vpop.f32.mrb[5].mxu1 }
 0x1d3   : > { %v818_v55 = vadd.f32 %v1082_v51, %v817_v54  ;;  %v1177_v56 = vpop.f32.mrb[6].mxu1 }
 0x1d4   : > { %v829_v57 = vadd.f32 %v1177_v56, %v1082_v51  ;;  %v820_v58 = vpop.f32.mrb[7].mxu1  ;;  %v834_v60 = vmax.f32 %v826_v53, 0.0 }
 0x1d5   : > { %v821_v59 = vadd.f32 %v1082_v51, %v820_v58  ;;  %v832_v62 = vmax.f32 %v818_v55, 0.0 }
 0x1d6   : > { %v835_v61 = vmax.f32 %v829_v57, 0.0 }
 0x1d7   : > { %v833_v63 = vmax.f32 %v821_v59, 0.0 }
 0x1d8   : > { %v837_v0 = vpack.c.bf16 %v835_v61, %v834_v60 }
 0x1d9   : > { %v836_v1 = vpack.c.bf16 %v833_v63, %v832_v62 }
 0x1db   : > { %1194 = vmatprep.mubr.bf16.mxu0 %v836_v1 }
 0x1dc   : > { %1195 = vmatmul.mubr.bf16.vlgmr.msra.gmra.mrb[4].mxu0 %v837_v0 }
 0x2af   : > { %v1196_v3 = vpop.f32.mrb[4].mxu0 }
 0x2b0   : > { %v943_v5 = vpop.f32.mrb[5].mxu0  ;;  %v952_v9 = vadd.f32 %v1196_v3, %v1091_v2 }
 0x2b1   : > { %v944_v6 = vadd.f32 %v1091_v2, %v943_v5  ;;  %v1197_v7 = vpop.f32.mrb[6].mxu0 }
 0x2b2   : > { %v946_v12 = vpop.f32.mrb[7].mxu0  ;;  %v955_v15 = vadd.f32 %v1197_v7, %v1091_v2  ;;  %v964_v19 = vadd.f32 %v960_v10, %v952_v9 }
 0x2b3   : > { %v962_v14 = vadd.f32 %v958_v4, %v944_v6  ;;  %v947_v17 = vadd.f32 %v1091_v2, %v946_v12 }
 0x2b4   : > { %v965_v20 = vadd.f32 %v961_v16, %v955_v15  ;;  %968 = vst.msk [vmem:[%s432_s13 + $0x10] sm:$0xff] %vm473_vm0, %v964_v19 }
 0x2b5   : > { %966 = vst.msk [vmem:[%s432_s13] sm:$0xff] %vm473_vm0, %v962_v14  ;;  %v963_v18 = vadd.f32 %v959_v8, %v947_v17 }
 0x2b6   : > { %969 = vst.msk [vmem:[%s432_s13 + $0x18] sm:$0xff] %vm473_vm0, %v965_v20 }
 0x2b7   : > { %967 = vst.msk [vmem:[%s432_s13 + $0x8] sm:$0xff] %vm473_vm0, %v963_v18 }
 0x2b8 PF: > { %s21_s17 = sadd.s32 1, %s1250_s17  }
 0x2b9   : > { %p18_p4 = scmp.ge.s32.totalorder %s21_s17, 4  }
 0x2bb   :  { %20 = sbr.rel (!%p18_p4) target bundleno = 1 (0x1), region = 100 }

</bundles_post_ra>
